<compile_context>
chip_gen: v7x
topology: tpu7x:2x2x1
jax: 0.10.0
libtpu: 0.0.40
codegen_flags: <defaults>
</compile_context>

<pallas_src>
import functools

import jax
import jax.numpy as jnp
from jax import lax
from jax.experimental import pallas as pl
from jax.experimental.pallas import tpu as pltpu


def _rmsnorm_kernel(x_ref, w_ref, o_ref, *, eps, inv_dim):
    # x_ref: (tile_rows, dim), w_ref: (1, dim), o_ref: (tile_rows, dim)
    x = x_ref[...].astype(jnp.float32)                  # x.float() (single upcast)
    ss = jnp.sum(x * x, axis=-1, keepdims=True)         # sum(x^2) over last axis
    scale = lax.rsqrt(ss * inv_dim + eps)               # mean folded into rsqrt arg
    normed = (x * scale).astype(x_ref.dtype)            # .type_as(x) precision step
    # weight * normed follows PyTorch's dtype promotion; final cast is a
    # no-op when o_ref.dtype already equals that promotion.
    o_ref[...] = (w_ref[...] * normed).astype(o_ref.dtype)


def _cdiv(a, b):
    return -(-a // b)


def _round_up(n, m):
    return _cdiv(n, m) * m


def _sublane_packing(dtype):
    # f32 -> 8 rows per vreg sublane group, bf16 -> 16, int8/fp8 -> 32.
    return 8 * max(1, 4 // jnp.dtype(dtype).itemsize)


def _chip_defaults():
    """(block_budget_bytes, vmem_limit_bytes) tuned per TPU generation."""
    try:
        kind = jax.devices()[0].device_kind.lower()
    except Exception:  # pragma: no cover - e.g. AOT on CPU
        kind = ""
    if "v7" in kind:
        # 64 MiB physical VMEM, 32 MiB scoped default: smaller blocks.
        return 12 * 1024 * 1024, 32 * 1024 * 1024
    # v5e / v6e: 128 MiB physical VMEM -> bigger blocks amortize the
    # ~0.35 us per-grid-step overhead; 64 MiB scoped limit is safe.
    return 24 * 1024 * 1024, 64 * 1024 * 1024


def rmsnorm(x, weight, eps=1e-6, *, tile_rows=None, out_dtype=None,
            block_budget_bytes=None, vmem_limit_bytes=None,
            min_step_bytes=2 * 1024 * 1024, target_steps=8):
    """RMSNorm over the last axis of x.  weight has shape (dim,).

    out_dtype defaults to promote(weight.dtype, x.dtype) (bit-matching the
    PyTorch module).  Pass out_dtype=x.dtype for bf16 activations when the
    consumer accepts it: ~25-33% wall-time win on every generation.
    """
    orig_shape = x.shape
    dim = orig_shape[-1]
    x2d = x.reshape(-1, dim)
    rows = x2d.shape[0]

    if out_dtype is None:
        out_dtype = jnp.promote_types(weight.dtype, x.dtype)

    in_b = jnp.dtype(x.dtype).itemsize
    out_b = jnp.dtype(out_dtype).itemsize
    w_b = jnp.dtype(weight.dtype).itemsize

    default_budget, default_vmem = _chip_defaults()
    if block_budget_bytes is None:
        block_budget_bytes = default_budget
    if vmem_limit_bytes is None:
        vmem_limit_bytes = default_vmem

    packing = max(_sublane_packing(x.dtype), _sublane_packing(out_dtype))
    rows_rounded = _round_up(rows, packing)

    # VMEM bytes per block row: double-buffered in + out blocks PLUS ~3 full
    # f32 intermediates materialized inside the kernel body.
    bytes_per_row_vmem = 2 * dim * (in_b + out_b) + 3 * dim * 4
    # HBM traffic per block row (what each grid step actually moves).
    bytes_per_row_hbm = dim * (in_b + out_b)

    if tile_rows is None:
        max_tile = max(packing,
                       (block_budget_bytes // bytes_per_row_vmem)
                       // packing * packing)
        # Floor: each grid step should still move >= min_step_bytes of HBM
        # traffic -- below that, extra steps just add per-step overhead and
        # expose the DMA instead of hiding it behind compute.
        min_tile = max(packing,
                       _round_up(_cdiv(min_step_bytes, bytes_per_row_hbm),
                                 packing))
        tile_rows = max_tile
        if _cdiv(rows, tile_rows) < target_steps:
            shrunk = max(min_tile,
                         _round_up(_cdiv(rows, target_steps), packing))
            tile_rows = min(tile_rows, shrunk)
    tile_rows = max(packing, _round_up(tile_rows, packing))
    tile_rows = min(tile_rows, rows_rounded)

    # Megacore (v7x) balance: prefer an even number of grid steps so both
    # TensorCores get equal work, as long as per-step traffic stays healthy.
    steps = _cdiv(rows, tile_rows)
    if steps > 1 and steps % 2 == 1:
        bumped = max(packing, _round_up(_cdiv(rows, steps + 1), packing))
        if (_cdiv(rows, bumped) % 2 == 0
                and bumped * bytes_per_row_hbm >= min_step_bytes // 2):
            tile_rows = bumped
            steps = _cdiv(rows, tile_rows)

    # Make sure the scoped-VMEM limit covers the real footprint (blocks +
    # f32 intermediates + weight) with a little slack.
    # TODO(synk): add a dim-tiled (two-pass / resident-accumulator) variant
    # for hidden sizes so wide that even a packing-row block exceeds scoped
    # VMEM (hits earlier on v7x's 64 MiB).
    needed_vmem = tile_rows * bytes_per_row_vmem + 2 * dim * 4 + (1 << 20)
    vmem_limit_bytes = max(vmem_limit_bytes, needed_vmem)

    grid = (steps,)                      # tail block is masked; no pad/slice
    w2d = weight.reshape(1, dim)

    # Note: `dim` not a multiple of 128 forces masked (vst.msk) stores; for
    # ragged hidden sizes prefer padding the feature axis at the caller once
    # rather than per-call here (pad/slice would add two full HBM passes).
    cost = pl.CostEstimate(
        flops=4 * rows * dim,            # square + reduce + scale + weight mul
        transcendentals=rows,            # one rsqrt per row
        bytes_accessed=rows * dim * (in_b + out_b) + dim * w_b,
    )

    out = pl.pallas_call(
        functools.partial(_rmsnorm_kernel, eps=eps, inv_dim=1.0 / dim),
        out_shape=jax.ShapeDtypeStruct((rows, dim), out_dtype),
        grid_spec=pltpu.PrefetchScalarGridSpec(
            num_scalar_prefetch=0,
            grid=grid,
            in_specs=[
                pl.BlockSpec((tile_rows, dim), lambda i: (i, 0)),
                pl.BlockSpec((1, dim), lambda i: (0, 0)),   # resident weight
            ],
            out_specs=pl.BlockSpec((tile_rows, dim), lambda i: (i, 0)),
        ),
        compiler_params=pltpu.CompilerParams(
            dimension_semantics=("parallel",),
            vmem_limit_bytes=vmem_limit_bytes),
        cost_estimate=cost,
    )(x2d, w2d)

    return out.reshape(orig_shape[:-1] + (dim,))


def _ref_rmsnorm(x, weight, eps=1e-6):
    xf = x.astype(jnp.float32)
    normed = (xf * lax.rsqrt(jnp.mean(xf * xf, axis=-1, keepdims=True) + eps)
              ).astype(x.dtype)
    return weight * normed


if __name__ == "__main__":
    key = jax.random.PRNGKey(0)
    k1, k2 = jax.random.split(key)
    batch, seq, hidden = 2, 8, 32

    # f32 path (matches nn.Parameter(torch.ones(dim)) init).
    x = jax.random.normal(k1, (batch, seq, hidden), dtype=jnp.float32)
    weight = jnp.ones((hidden,), dtype=jnp.float32)

    out = jax.block_until_ready(rmsnorm(x, weight, eps=1e-6))
    ref = _ref_rmsnorm(x, weight, eps=1e-6)
    assert out.shape == ref.shape and out.dtype == ref.dtype
    assert jnp.allclose(out, ref, atol=1e-5, rtol=1e-5)

    # bf16 input + rows not a multiple of the tile: exercises the masked
    # tail block and the .type_as(x) precision step (default f32 output,
    # bit-matching PyTorch's promotion).
    xb = jax.random.normal(k2, (3, 5, hidden), dtype=jnp.bfloat16)
    outb = jax.block_until_ready(rmsnorm(xb, weight, eps=1e-6))
    refb = _ref_rmsnorm(xb, weight, eps=1e-6)
    assert outb.shape == refb.shape and outb.dtype == refb.dtype
    assert jnp.allclose(outb.astype(jnp.float32), refb.astype(jnp.float32),
                        atol=2e-2, rtol=2e-2)

    # Reduced-traffic path: bf16 output (explicit caller opt-in).
    outc = jax.block_until_ready(
        rmsnorm(xb, weight, eps=1e-6, out_dtype=xb.dtype))
    assert outc.dtype == xb.dtype
    assert jnp.allclose(outc.astype(jnp.float32), refb.astype(jnp.float32),
                        atol=3e-2, rtol=3e-2)

    print("KERNEL_OK")
</pallas_src>

<mosaic_0001>
module attributes {stable_mosaic.version = 11 : i64} {
  func.func @_rmsnorm_kernel(%arg0: i32, %arg1: memref<16x32xf32, #tpu.memory_space<vmem>>, %arg2: memref<1x32xf32, #tpu.memory_space<vmem>>, %arg3: memref<16x32xf32, #tpu.memory_space<vmem>>) attributes {dimension_semantics = [#tpu.dimension_semantics<parallel>], iteration_bounds = array<i64: 1>, scalar_prefetch = 0 : i64, scratch_operands = 0 : i64, tpu.core_type = #tpu.core_type<tc>, window_params = [{transform_indices = @transform_0, window_bounds = array<i64: 16, 32>}, {pipeline_mode = #tpu.pipeline_mode<synchronous>, transform_indices = @transform_1, window_bounds = array<i64: 1, 32>}, {transform_indices = @transform_2, window_bounds = array<i64: 16, 32>}]} {
    %c0 = arith.constant 0 : index
    %c0_0 = arith.constant 0 : index
    %0 = vector.load %arg1[%c0, %c0_0] : memref<16x32xf32, #tpu.memory_space<vmem>>, vector<16x32xf32>
    %1 = arith.mulf %0, %0 : vector<16x32xf32>
    %cst = arith.constant dense<0.000000e+00> : vector<16xf32>
    %2 = vector.multi_reduction <add>, %1, %cst [1] : vector<16x32xf32> to vector<16xf32>
    %3 = vector.shape_cast %2 : vector<16xf32> to vector<16x1xf32>
    %cst_1 = arith.constant 3.125000e-02 : f32
    %4 = vector.broadcast %cst_1 : f32 to vector<16x1xf32>
    %5 = arith.mulf %3, %4 : vector<16x1xf32>
    %cst_2 = arith.constant 9.99999997E-7 : f32
    %6 = vector.broadcast %cst_2 : f32 to vector<16x1xf32>
    %7 = arith.addf %5, %6 : vector<16x1xf32>
    %8 = math.rsqrt %7 : vector<16x1xf32>
    %9 = vector.broadcast %8 : vector<16x1xf32> to vector<16x32xf32>
    %10 = arith.mulf %0, %9 : vector<16x32xf32>
    %c0_3 = arith.constant 0 : index
    %c0_4 = arith.constant 0 : index
    %11 = vector.load %arg2[%c0_3, %c0_4] : memref<1x32xf32, #tpu.memory_space<vmem>>, vector<1x32xf32>
    %12 = vector.broadcast %11 : vector<1x32xf32> to vector<16x32xf32>
    %13 = arith.mulf %12, %10 : vector<16x32xf32>
    %c0_5 = arith.constant 0 : index
    %c0_6 = arith.constant 0 : index
    %14 = vector.load %arg3[%c0_5, %c0_6] : memref<16x32xf32, #tpu.memory_space<vmem>>, vector<16x32xf32>
    tpu.vector_store %arg3[%c0_5, %c0_6], %13 {strides = array<i32>} : memref<16x32xf32, #tpu.memory_space<vmem>>, vector<16x32xf32>,
    return
  }
  func.func @transform_0(%arg0: i32) -> (i32, i32) {
    %c0_i32 = arith.constant 0 : i32
    %c0_i32_0 = arith.constant 0 : i32
    return %arg0, %c0_i32 : i32, i32
  }
  func.func @transform_1(%arg0: i32) -> (i32, i32) {
    %c0_i32 = arith.constant 0 : i32
    %c0_i32_0 = arith.constant 0 : i32
    %c0_i32_1 = arith.constant 0 : i32
    return %c0_i32, %c0_i32_0 : i32, i32
  }
  func.func @transform_2(%arg0: i32) -> (i32, i32) {
    %c0_i32 = arith.constant 0 : i32
    %c0_i32_0 = arith.constant 0 : i32
    return %arg0, %c0_i32 : i32, i32
  }
}

</mosaic_0001>

<bundles_post_ra>
// kernel: tpu_custom_call.1
= control target key start
LH: loop header
LB: loop body
LE: loop exit
PB: predicated region body
PF: predicated region fallthrough
CT: control target
= control target key end

     0   :  { %7 = vsyncpa [#allocation3], 0  ;;  %s234_s0 = inlined_call_operand.hbm [shape: f32[16,32], index: 0, kind: input, shape index: {}]   ;;  %s235_s1 = inlined_call_operand.hbm [shape: f32[1,32], index: 1, kind: input, shape index: {}]   ;;  %s236_s2 = inlined_call_operand.hbm [shape: f32[16,32], index: 2, kind: output, shape index: {}]  }
   0x1   :  { %8 = vsyncpa [#allocation6], 0 }
   0x2   :  { %9 = vsyncpa [#allocation4], 0  ;;  %s168_s9 = smov [#allocation2]   ;;  %s96_s13 = scalar_lea.hbm %s234_s0, 256 }
   0x3   :  { %s15_s10 = sshll.u32 %s168_s9, 4  ;;  %p97_p0 = scmp.ne.s32.totalorder %s234_s0, %s96_s13  ;;  %s16_s10 = int_to_ptr.vmem [resolvable:$true] %s15_s10 }
   0x4   :  { %p100_p1 = scmp.lt.u32.totalorder %s96_s13, %s234_s0 }
   0x6   :  { %p102_p2 = pnand %p100_p1, %p97_p0 }
   0x8   :  { %105 = shalt.err (!%p102_p2)
}
   0x9   :  { %s106_s18 = scalar_lea.vmem %s16_s10, 256  ;;  %p111_p4 = scmp.lt.s32.totalorder %s16_s10, %s16_s10 }
   0xa   :  { %p107_p3 = scmp.ne.s32.totalorder %s16_s10, %s106_s18  ;;  %p112_p5 = scmp.lt.s32.totalorder %s106_s18, %s106_s18 }
   0xc   :  { %p113_p6 = por %p112_p5, %p111_p4 }
   0xe   :  { %p114_p7 = pnand %p113_p6, %p107_p3 }
  0x10   :  { %117 = shalt.err (!%p114_p7)
}
  0x11   :  { %s169_s19 = smov 128   ;;  %s170_s20 = smov 8  }
  0x12   :  { %21 = dma.hbm_to_vmem [thread:$0]  %s234_s0, 256, %s16_s10, [#allocation3], %s169_s19, %s169_s19, %s170_s20  }
  0x13   :  { %s171_s23 = smov [#allocation5]   ;;  %s118_s27 = scalar_lea.hbm %s235_s1, 16 }
  0x14   :  { %s28_s24 = sshll.u32 %s171_s23, 4  ;;  %p119_p8 = scmp.ne.s32.totalorder %s235_s1, %s118_s27  ;;  %s29_s24 = int_to_ptr.vmem [resolvable:$true] %s28_s24 }
  0x15   :  { %p122_p9 = scmp.lt.u32.totalorder %s118_s27, %s235_s1 }
  0x17   :  { %p124_p10 = pnand %p122_p9, %p119_p8 }
  0x19   :  { %127 = shalt.err (!%p124_p10)
}
  0x1a   :  { %s128_s4 = scalar_lea.vmem %s29_s24, 16  ;;  %s132_s0 = scalar_lea.vmem %s29_s24, 32 }
  0x1b   :  { %p129_p11 = scmp.ne.s32.totalorder %s29_s24, %s128_s4  ;;  %p133_p12 = scmp.lt.s32.totalorder %s29_s24, %s29_s24 }
  0x1c   :  { %p134_p13 = scmp.lt.s32.totalorder %s132_s0, %s128_s4 }
  0x1e   :  { %p135_p0 = por %p134_p13, %p133_p12 }
  0x20   :  { %p136_p1 = pnand %p135_p0, %p129_p11 }
  0x22   :  { %139 = shalt.err (!%p136_p1)
}
  0x23   :  { %31 = dma.hbm_to_vmem [thread:$0]  %s235_s1, 16, %s29_s24, [#allocation6]  }
  0x24   :  { %162 = dma.done.wait [#allocation3], 256  }
  0x25   :  { %163 = vsyncadd [#allocation3], 4294967040 }
  0x26   :  { %164 = dma.done.wait [#allocation6], 16  }
  0x27   :  { %165 = vsyncadd [#allocation6], 4294967280  ;;  %v38_v0 = vld [vmem:[#allocation2] sm:$0xff]  ;;  %vm42_vm0 = vcmask 261120   ;;  %v39_v1 = vld [vmem:[#allocation2 + $0x8] sm:$0xff]  ;;  %s172_s1 = smov [#allocation7]  }
  0x28   :  { %v40_v2 = vmul.f32 %v38_v0, %v38_v0  ;;  %v41_v3 = vmul.f32 %v39_v1, %v39_v1  ;;  %v86_v13 = vld [vmem:[#allocation5] ss:$0 sm:$0xff]  ;;  %s73_s7 = sshll.u32 %s172_s1, 4  ;;  %s74_s7 = int_to_ptr.vmem [resolvable:$true] %s73_s7 }
  0x29   :  { %s140_s8 = scalar_lea.vmem %s74_s7, 256  ;;  %p145_p3 = scmp.lt.s32.totalorder %s74_s7, %s74_s7 }
  0x2a   :  { %v43_v4 = vsel %vm42_vm0, %v40_v2, 0.0  ;;  %v46_v5 = vsel %vm42_vm0, %v41_v3, 0.0  ;;  %p141_p2 = scmp.ne.s32.totalorder %s74_s7, %s140_s8  ;;  %p146_p4 = scmp.lt.s32.totalorder %s140_s8, %s140_s8 }
  0x2b   :  { %44 = vadd.xlane.f32.xlu0 %v43_v4 }
  0x2c   :  { %p147_p5 = por %p146_p4, %p145_p3 }
  0x2e   :  { %p148_p6 = pnand %p147_p5, %p141_p2 }
  0x2f   :  { %47 = vadd.xlane.f32.xlu0 %v46_v5 }
  0xb8   :  { %v45_v6 = vpop.xlane.xlu0 %44 }
  0xb9   :  { %v49_v7 = vmul.f32 0.03125, %v45_v6 }
  0xbb   :  { %v51_v8 = vadd.f32 1e-06, %v49_v7 }
  0xbc   :  { %v48_v9 = vpop.xlane.xlu0 %47 }
  0xbd   :  { %92 = vrsqrt.f32 %v51_v8  ;;  %v50_v10 = vmul.f32 0.03125, %v48_v9 }
  0xbf   :  { %v52_v11 = vadd.f32 1e-06, %v50_v10 }
  0xc1   :  { %94 = vrsqrt.f32 %v52_v11 }
  0xc7   :  { %v93_v12 = vpop.eup %92 }
  0xc8   :  { %v55_v14 = vmul.f32 %v93_v12, %v38_v0 }
  0xca   :  { %v64_v15 = vmul.f32 %v86_v13, %v55_v14 }
  0xcb   :  { %v95_v16 = vpop.eup %94 }
  0xcc   :  { %v56_v17 = vmul.f32 %v95_v16, %v39_v1  ;;  %66 = vst.msk [vmem:[#allocation7] sm:$0xff] %vm42_vm0, %v64_v15 }
  0xce   :  { %v65_v18 = vmul.f32 %v86_v13, %v56_v17 }
  0xd0   :  { %67 = vst.msk [vmem:[#allocation7 + $0x8] sm:$0xff] %vm42_vm0, %v65_v18 }
  0xd1   :  { %151 = shalt.err (!%p148_p6)
}
  0xd2   :  { %s152_s11 = scalar_lea.hbm %s236_s2, 256 }
  0xd3   :  { %p153_p7 = scmp.ne.s32.totalorder %s236_s2, %s152_s11  ;;  %p156_p8 = scmp.lt.u32.totalorder %s152_s11, %s236_s2 }
  0xd5   :  { %p158_p9 = pnand %p156_p8, %p153_p7 }
  0xd7   :  { %161 = shalt.err (!%p158_p9)
}
  0xd8   :  { %79 = dma.vmem_to_hbm [thread:$0]  %s74_s7, 256, %s236_s2, [#allocation4], %s169_s19, %s169_s19, %s170_s20  }
  0xd9   :  { %166 = dma.done.wait [#allocation4], 256  }
  0xda   :  { %167 = vsyncadd [#allocation4], 4294967040 }
  0xdb   :  { %83 = vsyncpa [#allocation3], 1 }
  0xdc   :  { %84 = vsyncpa [#allocation6], 1 }
  0xdd   :  { %85 = vsyncpa [#allocation4], 1 }

</bundles_post_ra>
